<compile_context>
chip_gen: v7x
topology: tpu7x:2x2x1
jax: 0.10.0
libtpu: 0.0.40
codegen_flags: <defaults>
</compile_context>

<pallas_src>
import jax
import jax.numpy as jnp
from jax.experimental import pallas as pl
from jax.experimental.pallas import tpu as pltpu


def gates_kernel(x_ref, w1_ref, b1_ref, w2_ref, b2_ref, o_ref):
    # x_ref : (1, Cin, TL)   channels on sublanes, positions on lanes
    # w1_ref: (mlp, Cin)     b1_ref: (mlp, 1)
    # w2_ref: (Cout, mlp)    b2_ref: (Cout, 1)
    # o_ref : (1, Cout, TL)
    x = x_ref[0]                                                       # (Cin, TL)

    # Elementwise dtype: bf16 activations keep the bias+ReLU in bf16 (v6e/v7x
    # have bf16 VPU ALUs); everything else stays in f32.  Dots always
    # accumulate in f32 on the MXU.
    bf16_path = (jnp.dtype(x_ref.dtype) == jnp.dtype(jnp.bfloat16)
                 and jnp.dtype(w1_ref.dtype) == jnp.dtype(jnp.bfloat16))
    ew_dtype = jnp.bfloat16 if bf16_path else jnp.float32

    h = jnp.dot(w1_ref[...], x, preferred_element_type=jnp.float32)    # (mlp, TL) f32
    h = jnp.maximum(h.astype(ew_dtype) + b1_ref[...].astype(ew_dtype),
                    jnp.zeros((), ew_dtype))                           # bias + ReLU
    y = jnp.dot(w2_ref[...], h.astype(w2_ref.dtype),
                preferred_element_type=jnp.float32)                    # (Cout, TL) f32

    if bf16_path and jnp.dtype(o_ref.dtype) == jnp.dtype(jnp.bfloat16):
        o_ref[0] = y.astype(jnp.bfloat16) + b2_ref[...].astype(jnp.bfloat16)
    else:
        o_ref[0] = (y + b2_ref[...].astype(jnp.float32)).astype(o_ref.dtype)


def _pick_tile_l(L, cin, cout, mlp, dtype,
                 block_budget_bytes=28 << 20, cap=128 * 1024):
    """Largest lane tile such that double-buffered in+out blocks (with
    sublane/lane padding) plus the resident weight blocks stay under budget."""
    itemsize = jnp.dtype(dtype).itemsize
    sublane = max(8, 32 // max(itemsize, 1))        # 8 f32, 16 bf16, 32 int8
    spad = lambda c: -(-c // sublane) * sublane     # pad sublane (2nd-to-last) dim
    lpad = lambda c: -(-c // 128) * 128             # pad lane (last) dim
    cin_p, cout_p, mlp_p = spad(cin), spad(cout), spad(mlp)

    # VMEM-resident weights/biases (count double-buffered to be conservative).
    resident = 2 * itemsize * (mlp_p * lpad(cin) + mlp_p * 128 +
                               cout_p * lpad(mlp) + cout_p * 128)
    budget = max(block_budget_bytes - resident, 1 << 20)

    per_lane = 2 * (cin_p + cout_p) * itemsize      # double-buffered in + out
    tl = min(budget // per_lane, cap, L)
    if tl >= L:
        return L                                    # full-extent block: always legal
    tl = max(int((tl // 128) * 128), 128)
    # Prefer a tile (multiple of 128) that divides L: no ragged masked edge block.
    for cand in range(tl, max(tl // 2, 127), -128):
        if L % cand == 0:
            return cand
    return tl


def gates_forward(x_ncl, w1, b1, w2, b2):
    """x (N, Cin, L) -> (N, Cout, L), matching torch Gates.forward (NCL throughout)."""
    N, Cin, L = x_ncl.shape
    mlp = w1.shape[0]
    Cout = w2.shape[0]
    itemsize = jnp.dtype(x_ncl.dtype).itemsize

    tl = _pick_tile_l(L, Cin, Cout, mlp, x_ncl.dtype)
    # L-tiles lead the grid so v7x's 2 TCs split the long, even axis 50/50
    # regardless of N; both axes are independent -> "parallel".
    grid = (pl.cdiv(L, tl), N)

    flops = 2 * N * L * (Cin * mlp + mlp * Cout)
    bytes_accessed = (x_ncl.size + N * Cout * L) * itemsize + (
        (w1.size + b1.size + w2.size + b2.size) * jnp.dtype(w1.dtype).itemsize)

    return pl.pallas_call(
        gates_kernel,
        out_shape=jax.ShapeDtypeStruct((N, Cout, L), x_ncl.dtype),
        grid_spec=pltpu.PrefetchScalarGridSpec(
            num_scalar_prefetch=0,
            grid=grid,
            in_specs=[
                pl.BlockSpec((1, Cin, tl), lambda l, n: (n, 0, l)),   # x tile
                pl.BlockSpec((mlp, Cin),   lambda l, n: (0, 0)),      # w1 (resident)
                pl.BlockSpec((mlp, 1),     lambda l, n: (0, 0)),      # b1 (resident)
                pl.BlockSpec((Cout, mlp),  lambda l, n: (0, 0)),      # w2 (resident)
                pl.BlockSpec((Cout, 1),    lambda l, n: (0, 0)),      # b2 (resident)
            ],
            out_specs=pl.BlockSpec((1, Cout, tl), lambda l, n: (n, 0, l)),
        ),
        compiler_params=pltpu.CompilerParams(
            dimension_semantics=("parallel", "parallel"),
            vmem_limit_bytes=40 * 1024 * 1024,   # safe on v7x's 64 MiB physical VMEM
        ),
        cost_estimate=pl.CostEstimate(
            flops=flops, transcendentals=0, bytes_accessed=bytes_accessed),
    )(x_ncl, w1, b1, w2, b2)


def init_gates_params(key, input_dim, mlp_dim, output_dim, dtype=jnp.float32):
    """Deterministic synthetic params.  Torch Conv1d weight is (out, in, 1);
    we keep the squeezed (out, in) form so the kernel left-multiplies."""
    k1, k2, k3, k4 = jax.random.split(key, 4)
    w1 = jax.random.normal(k1, (mlp_dim, input_dim), dtype) * 0.1
    b1 = jax.random.normal(k2, (mlp_dim, 1), dtype) * 0.1
    w2 = jax.random.normal(k3, (output_dim, mlp_dim), dtype) * 0.1
    b2 = jax.random.normal(k4, (output_dim, 1), dtype) * 0.1
    return w1, b1, w2, b2


if __name__ == "__main__":
    # Small shapes consistent with the module: Conv1d expects (N, C, L).
    batch, input_dim, mlp_dim, output_dim, seq = 2, 4, 32, 8, 16

    key = jax.random.PRNGKey(0)
    kx, kp = jax.random.split(key)
    x = jax.random.normal(kx, (batch, input_dim, seq), jnp.float32)
    w1, b1, w2, b2 = init_gates_params(kp, input_dim, mlp_dim, output_dim)

    out = jax.block_until_ready(gates_forward(x, w1, b1, w2, b2))

    # Pure-JAX reference check (same math as the torch module).
    h = jnp.einsum("mc,ncl->nml", w1, x) + b1[None]
    h = jnp.maximum(h, 0.0)
    ref = jnp.einsum("om,nml->nol", w2, h) + b2[None]

    assert out.shape == (batch, output_dim, seq)
    assert jnp.allclose(out, ref, atol=1e-5, rtol=1e-5)

    print("KERNEL_OK")
</pallas_src>

<mosaic_0001>
module attributes {stable_mosaic.version = 11 : i64} {
  func.func @gates_kernel(%arg0: i32, %arg1: i32, %arg2: memref<1x4x16xf32, #tpu.memory_space<vmem>>, %arg3: memref<32x4xf32, #tpu.memory_space<vmem>>, %arg4: memref<32x1xf32, #tpu.memory_space<vmem>>, %arg5: memref<8x32xf32, #tpu.memory_space<vmem>>, %arg6: memref<8x1xf32, #tpu.memory_space<vmem>>, %arg7: memref<1x8x16xf32, #tpu.memory_space<vmem>>) attributes {dimension_semantics = [#tpu.dimension_semantics<parallel>, #tpu.dimension_semantics<parallel>], iteration_bounds = array<i64: 1, 2>, scalar_prefetch = 0 : i64, scratch_operands = 0 : i64, tpu.core_type = #tpu.core_type<tc>, window_params = [{transform_indices = @transform_0, window_bounds = array<i64: 1, 4, 16>}, {pipeline_mode = #tpu.pipeline_mode<synchronous>, transform_indices = @transform_1, window_bounds = array<i64: 32, 4>}, {pipeline_mode = #tpu.pipeline_mode<synchronous>, transform_indices = @transform_2, window_bounds = array<i64: 32, 1>}, {pipeline_mode = #tpu.pipeline_mode<synchronous>, transform_indices = @transform_3, window_bounds = array<i64: 8, 32>}, {pipeline_mode = #tpu.pipeline_mode<synchronous>, transform_indices = @transform_4, window_bounds = array<i64: 8, 1>}, {transform_indices = @transform_5, window_bounds = array<i64: 1, 8, 16>}]} {
    %c0 = arith.constant 0 : index
    %c0_0 = arith.constant 0 : index
    %c0_1 = arith.constant 0 : index
    %0 = vector.load %arg2[%c0, %c0_0, %c0_1] : memref<1x4x16xf32, #tpu.memory_space<vmem>>, vector<1x4x16xf32>
    %1 = vector.shape_cast %0 : vector<1x4x16xf32> to vector<4x16xf32>
    %c0_2 = arith.constant 0 : index
    %c0_3 = arith.constant 0 : index
    %2 = vector.load %arg3[%c0_2, %c0_3] : memref<32x4xf32, #tpu.memory_space<vmem>>, vector<32x4xf32>
    %cst = arith.constant dense<0.000000e+00> : vector<32x16xf32>
    %3 = tpu.matmul %2, %1, %cst {dimension_numbers = #tpu.dot_dimension_numbers<[1], [0], [0], [1], [0, 0, 1, 1], [], []>} : vector<32x4xf32>, vector<4x16xf32>, vector<32x16xf32> -> vector<32x16xf32>
    %c0_4 = arith.constant 0 : index
    %c0_5 = arith.constant 0 : index
    %4 = vector.load %arg4[%c0_4, %c0_5] : memref<32x1xf32, #tpu.memory_space<vmem>>, vector<32x1xf32>
    %5 = vector.broadcast %4 : vector<32x1xf32> to vector<32x16xf32>
    %6 = arith.addf %3, %5 : vector<32x16xf32>
    %cst_6 = arith.constant 0.000000e+00 : f32
    %7 = vector.broadcast %cst_6 : f32 to vector<32x16xf32>
    %8 = arith.maximumf %6, %7 : vector<32x16xf32>
    %c0_7 = arith.constant 0 : index
    %c0_8 = arith.constant 0 : index
    %9 = vector.load %arg5[%c0_7, %c0_8] : memref<8x32xf32, #tpu.memory_space<vmem>>, vector<8x32xf32>
    %cst_9 = arith.constant dense<0.000000e+00> : vector<8x16xf32>
    %10 = tpu.matmul %9, %8, %cst_9 {dimension_numbers = #tpu.dot_dimension_numbers<[1], [0], [0], [1], [0, 0, 1, 1], [], []>} : vector<8x32xf32>, vector<32x16xf32>, vector<8x16xf32> -> vector<8x16xf32>
    %c0_10 = arith.constant 0 : index
    %c0_11 = arith.constant 0 : index
    %11 = vector.load %arg6[%c0_10, %c0_11] : memref<8x1xf32, #tpu.memory_space<vmem>>, vector<8x1xf32>
    %12 = vector.broadcast %11 : vector<8x1xf32> to vector<8x16xf32>
    %13 = arith.addf %10, %12 : vector<8x16xf32>
    %c0_12 = arith.constant 0 : index
    %c0_13 = arith.constant 0 : index
    %c0_14 = arith.constant 0 : index
    %14 = vector.load %arg7[%c0_12, %c0_13, %c0_14] : memref<1x8x16xf32, #tpu.memory_space<vmem>>, vector<1x8x16xf32>
    %15 = vector.shape_cast %14 : vector<1x8x16xf32> to vector<8x16xf32>
    %16 = vector.shape_cast %13 : vector<8x16xf32> to vector<1x8x16xf32>
    tpu.vector_store %arg7[%c0_12, %c0_13, %c0_14], %16 {strides = array<i32>} : memref<1x8x16xf32, #tpu.memory_space<vmem>>, vector<1x8x16xf32>,
    return
  }
  func.func @transform_0(%arg0: i32, %arg1: i32) -> (i32, i32, i32) {
    %c0_i32 = arith.constant 0 : i32
    %c0_i32_0 = arith.constant 0 : i32
    return %arg1, %c0_i32, %arg0 : i32, i32, i32
  }
  func.func @transform_1(%arg0: i32, %arg1: i32) -> (i32, i32) {
    %c0_i32 = arith.constant 0 : i32
    %c0_i32_0 = arith.constant 0 : i32
    %c0_i32_1 = arith.constant 0 : i32
    return %c0_i32, %c0_i32_0 : i32, i32
  }
  func.func @transform_2(%arg0: i32, %arg1: i32) -> (i32, i32) {
    %c0_i32 = arith.constant 0 : i32
    %c0_i32_0 = arith.constant 0 : i32
    %c0_i32_1 = arith.constant 0 : i32
    return %c0_i32, %c0_i32_0 : i32, i32
  }
  func.func @transform_3(%arg0: i32, %arg1: i32) -> (i32, i32) {
    %c0_i32 = arith.constant 0 : i32
    %c0_i32_0 = arith.constant 0 : i32
    %c0_i32_1 = arith.constant 0 : i32
    return %c0_i32, %c0_i32_0 : i32, i32
  }
  func.func @transform_4(%arg0: i32, %arg1: i32) -> (i32, i32) {
    %c0_i32 = arith.constant 0 : i32
    %c0_i32_0 = arith.constant 0 : i32
    %c0_i32_1 = arith.constant 0 : i32
    return %c0_i32, %c0_i32_0 : i32, i32
  }
  func.func @transform_5(%arg0: i32, %arg1: i32) -> (i32, i32, i32) {
    %c0_i32 = arith.constant 0 : i32
    %c0_i32_0 = arith.constant 0 : i32
    return %arg1, %c0_i32, %arg0 : i32, i32, i32
  }
}

</mosaic_0001>

<bundles_post_ra>
// kernel: tpu_custom_call.1
= control target key start
LH: loop header
LB: loop body
LE: loop exit
PB: predicated region body
PF: predicated region fallthrough
CT: control target
= control target key end

     0   :  { %10 = vsyncpa [#allocation3], 0  ;;  %s923_s0 = inlined_call_operand.vmem [shape: f32[2,4,16], index: 0, kind: input, shape index: {}]   ;;  %s924_s1 = inlined_call_operand.vmem [shape: f32[32,4], index: 1, kind: input, shape index: {}]   ;;  %s925_s2 = inlined_call_operand.vmem [shape: f32[32,1], index: 2, kind: input, shape index: {}]   ;;  %s926_s3 = inlined_call_operand.vmem [shape: f32[8,32], index: 3, kind: input, shape index: {}]   ;;  %s927_s4 = inlined_call_operand.vmem [shape: f32[8,1], index: 4, kind: input, shape index: {}]   ;;  %s928_s5 = inlined_call_operand.hbm [shape: f32[2,8,16], index: 5, kind: output, shape index: {}]  }
   0x1   :  { %12 = vsyncpa [#allocation3 + $0x1], 0  ;;  %s777_s18 = smov 0   ;;  %s779_s19 = smov 0  }
   0x2   :  { %s781_s20 = smov 0   ;;  %s783_s21 = smov 0  }
   0x3   :  { %s785_s22 = smov 0   ;;  %s787_s23 = smov 0  }
   0x4 LB: > { %s549_s24 = sadd.s32 4294967295, %s740_s23   ;;  %s550_s25 = sadd.s32 4294967294, %s740_s23   ;;  %s740_s23 = sphi %s787_s23, %s18_s23   ;;  %s736_s22 = sphi %s785_s22, %s935_s22   ;;  %s732_s21 = sphi %s783_s21, %s934_s21   ;;  %s728_s20 = sphi %s781_s20, %s933_s20   ;;  %s724_s19 = sphi %s779_s19, %s932_s19   ;;  %s720_s18 = sphi %s777_s18, %s931_s18  }
   0x5   : > { %s27_s26 = sadd.s32 1, %s736_s22  ;;  %s151_s27 = sadd.s32 1, %s728_s20 }
   0x6   : > { %p28_p0 = scmp.ge.s32.totalorder %s27_s26, 2  ;;  %p161_p1 = scmp.ne.s32.totalorder %s728_s20, %s724_s19 }
   0x7   : > { %p162_p2 = scmp.eq.s32.totalorder %s549_s24, 1  ;;  %p167_p3 = scmp.ne.s32.totalorder %s724_s19, %s720_s18 }
   0x8   : > { %s937_s26 = smov (%p28_p0, %s27_s26), 0  ;;  %p168_p5 = scmp.eq.s32.totalorder %s550_s25, 1 }
   0x9   : > { %p817_p4 = por %p162_p2, %p161_p1  ;;  %s146_s29 = ssub.s32 %s736_s22, %s937_s26 }
   0xa   : > { %p553_p6 = scmp.ge.s32.totalorder %s740_s23, 1  ;;  %p149_p7 = scmp.eq.s32.totalorder %s146_s29, 0 }
   0xb   : > { %p824_p8 = por %p168_p5, %p167_p3  ;;  %p208_p9 = scmp.lt.s32.totalorder %s740_s23, 3 }
   0xc   : > { %s830_s6 = scalar_select %p149_p7, %s728_s20, %s151_s27  }
   0xd   : > { %p209_p10 = pnand %p553_p6, %p208_p9 }
   0xe   : > { %p238_p11 = scmp.lt.s32.totalorder (!%p209_p10), %s732_s21, 1  ;;  %v246_v0 = vld [vmem:[%s924_s1] sm:$0xff] (!%p209_p10)  ;;  %vm274_vm0 = vcmask (!%p209_p10), 31744   ;;  %v742_v2 = vmov (!%p209_p10), 0   ;;  %v252_v3 = vld [vmem:[%s925_s2 + $0x10] sm:$0xff] (!%p209_p10)  ;;  %vm287_vm1 = vcmask (!%p209_p10), 1043456  }
   0xf   : > { %212 = sbr.rel (%p209_p10) target bundleno = 483 (0x1e3), region = 40  ;;  %578 = vmatprep.mubr.msk.f32.mxu0 (!%p209_p10), %vm274_vm0, %v246_v0  ;;  %v250_v1 = vld [vmem:[%s925_s2] sm:$0xff] (!%p209_p10)  ;;  %660 = vset.pattern.permute.xlu0 (!%p209_p10), %v742_v2  ;;  %v251_v4 = vld [vmem:[%s925_s2 + $0x8] sm:$0xff] (!%p209_p10)  ;;  %v253_v5 = vld [vmem:[%s925_s2 + $0x18] sm:$0xff] (!%p209_p10)  ;;  %v743_v11 = vmov (!%p209_p10), 0.0|0.0   ;;  %vm744_vm2 = vmmov (!%p209_p10), 0  }
  0x10   : > { %661 = vset.pattern.permute.xlu1 (!%p209_p10), %v742_v2  ;;  %256 = vperm.xlu0 (!%p209_p10), %660, %v250_v1   ;;  %v247_v7 = vld [vmem:[%s924_s1 + $0x8] sm:$0xff] (!%p209_p10)  ;;  %v248_v8 = vld [vmem:[%s924_s1 + $0x10] sm:$0xff] (!%p209_p10)  ;;  %v381_v9 = vld [vmem:[%s927_s4] sm:$0xff] (!%p209_p10)  ;;  %v745_v12 = vmov (!%p209_p10), 0.0   ;;  %vm387_vm3 = vcmask (!%p209_p10), 261120   ;;  %s235_s17 = sand.u32 (!%p209_p10), 1, %s724_s19  }
  0x11   : > { %266 = vperm.xlu1 (!%p209_p10), %661, %v252_v3   ;;  %v249_v10 = vld [vmem:[%s924_s1 + $0x18] sm:$0xff] (!%p209_p10)  ;;  %595 = vmatprep.subr.bf16.mxu1 (!%p209_p10), %v743_v11  ;;  %v380_v31 = vld [vmem:[%s926_s3] sm:$0xff] (!%p209_p10)  ;;  %s554_s24 = sshll.u32 (!%p209_p10), %s235_s17, 3  ;;  %vm461_vm4 = vcmask (!%p209_p10), 130048   ;;  %s464_s10 = scalar_lea.sflag (!%p209_p10), [#allocation3], %s235_s17 }
  0x12   : > { %592 = vmatprep.mubr.msk.f32.mxu1 (!%p209_p10), %vm744_vm2, %v745_v12  ;;  %s237_s27 = scalar_lea.vmem (!%p209_p10), [#allocation2], %s554_s24 }
  0x13   : > { %s478_s29 = sshll.u32 (!%p209_p10), %s237_s27, 4  ;;  %s878_s29 = int_to_ptr.vmem [resolvable:$true] %s478_s29 }
  0x14   : > { %261 = vperm.xlu0 (!%p209_p10), %660, %v251_v4  }
  0x15   : > { %271 = vperm.xlu1 (!%p209_p10), %661, %v253_v5  }
  0x16   : > { %s239_s11 = scalar_select %p238_p11, %s732_s21, 1 }
  0x18   : > { %s555_s14 = sshll.u32 %s239_s11, 2  ;;  %384 = vperm.xlu0 %660, %v381_v9   ;;  %s746_s11 = smov [#allocation2]  }
  0x19   : > { %s244_s25 = scalar_lea.vmem %s923_s0, %s555_s14  ;;  %s666_s12 = sshll.u32 %s746_s11, 4  ;;  %s667_s12 = int_to_ptr.vmem [resolvable:$false] %s666_s12 }
  0x1a   : > { %v245_v6 = vld [vmem:[%s244_s25] sm:$0xf]  ;;  %s563_s25 = sshll.u32 %s732_s21, 7  ;;  %s662_s21 = scalar_lea.vmem %s878_s29, 128 }
  0x1b   : > { %576 = vmatprep.subr.msk.mxu0 %vm287_vm1, %v245_v6  ;;  %s876_s9 = scalar_lea.hbm %s928_s5, %s563_s25  ;;  %p663_p12 = scmp.ne.s32.totalorder %s878_s29, %s662_s21 }
  0x1c   : > { %577 = vmatpush3.msk.msra.mxu0 %vm287_vm1, %v245_v6  ;;  %s668_s13 = scalar_lea.vmem %s667_s12, 256  ;;  %p669_p1 = scmp.lt.s32.totalorder %s878_s29, %s667_s12 }
  0x1d   : > { %579 = vmatmul.mubr.msk.f32.vlgmr.msra.gmra.mrb[0].mxu0 %vm274_vm0, %v247_v7  ;;  %p664_p13 = pnand %p663_p12, %p817_p4  ;;  %p670_p2 = scmp.lt.s32.totalorder %s668_s13, %s662_s21 }
  0x1e   : > { %581 = vmatprep.mubr.msk.f32.mxu0 %vm274_vm0, %v248_v8 }
  0x1f   : > { %p665_p0 = pneg %p664_p13  ;;  %p671_p3 = por %p670_p2, %p669_p1 }
  0x21   : > { %582 = vmatmul.mubr.msk.f32.gmra.mrb[2].mxu0 %vm274_vm0, %v249_v10  ;;  %p672_p5 = pnand %p671_p3, %p665_p0 }
  0x8f   : > { %v257_v13 = vpop.permute.xlu0 %256 }
  0x90   : > { %v267_v14 = vpop.permute.xlu1 %266 }
  0x93   : > { %v262_v15 = vpop.permute.xlu0 %261 }
  0x94   : > { %v272_v21 = vpop.permute.xlu1 %271 }
  0x97   : > { %v385_v32 = vpop.permute.xlu0 %384 }
  0xf0   : > { %v580_v16 = vpop.f32.mrb[0].mxu0 }
  0xf1   : > { %v363_v17 = vadd.f32 %v580_v16, %v262_v15  ;;  %v357_v18 = vpop.f32.mrb[1].mxu0 }
  0xf2   : > { %v358_v19 = vadd.f32 %v357_v18, %v257_v13 }
  0xf3   : > { %v377_v20 = vmax.f32 %v363_v17, 0.0 }
  0xf4   : > { %v376_v22 = vmax.f32 %v358_v19, 0.0  ;;  %v583_v23 = vpop.f32.mrb[2].mxu0 }
  0xf5   : > { %v373_v24 = vadd.f32 %v583_v23, %v272_v21  ;;  %v367_v25 = vpop.f32.mrb[3].mxu0 }
  0xf6   : > { %v368_v26 = vadd.f32 %v367_v25, %v267_v14  ;;  %v596_v27 = vpack.c.bf16 %v377_v20, %v376_v22 }
  0xf7   : > { %v379_v28 = vmax.f32 %v373_v24, 0.0 }
  0xf8   : > { %v378_v29 = vmax.f32 %v368_v26, 0.0  ;;  %597 = vmatpush3.bf16.msra.mxu1 %v596_v27 }
  0xf9   : > { %598 = vmatprep.subr.bf16.mxu1 %v743_v11 }
  0xfa   : > { %v599_v30 = vpack.c.bf16 %v379_v28, %v378_v29 }
  0xfc   : > { %600 = vmatpush3.bf16.msra.mxu1 %v599_v30 }
  0xff   : > { %593 = vmatmul.mubr.msk.f32.vlgmr.msra.gmra.mrb[0].mxu1 %vm387_vm3, %v380_v31 }
 0x1d2   : > { %v457_v33 = vpop.f32.mrb[0].mxu1 }
 0x1d3   : > { %v458_v34 = vadd.f32 %v457_v33, %v385_v32  ;;  %v594_v35 = vpop.f32.mrb[1].mxu1 }
 0x1d5   : > { %462 = vst.msk [vmem:[%s237_s27] sm:$0xff] %vm461_vm4, %v458_v34 }
 0x1d6   : > { %675 = shalt.err (!%p672_p5)
}
 0x1d7   : > { %s676_s14 = scalar_lea.hbm %s876_s9, 128  ;;  %s680_s17 = scalar_lea.hbm %s928_s5, 256 }
 0x1d8   : > { %p677_p6 = scmp.ne.s32.totalorder %s876_s9, %s676_s14  ;;  %p681_p10 = scmp.lt.u32.totalorder %s876_s9, %s928_s5 }
 0x1d9   : > { %p682_p11 = scmp.lt.u32.totalorder %s680_s17, %s676_s14  ;;  %p684_p13 = scmp.lt.u32.totalorder %s676_s14, %s876_s9 }
 0x1da   : > { %p678_p7 = pnand %p677_p6, %p817_p4 }
 0x1db   : > { %p683_p12 = por %p682_p11, %p681_p10 }
 0x1dc   : > { %p679_p9 = pneg %p678_p7 }
 0x1dd   : > { %p685_p0 = por %p684_p13, %p683_p12 }
 0x1df   : > { %p686_p1 = pnand %p685_p0, %p679_p9 }
 0x1e1   : > { %689 = shalt.err (!%p686_p1)
}
 0x1e2   : > { %601 = dma.vmem_to_hbm [thread:$0]  (%p817_p4), %s878_s29, 128, %s876_s9, %s464_s10  }
 0x1e3 PF: > { %p607_p2 = scmp.ge.s32.totalorder %s740_s23, 2  ;;  %s490_s27 = sand.u32 1, %s720_s18  }
 0x1e4   : > { %s491_s7 = scalar_lea.sflag [#allocation3], %s490_s27 }
 0x1e5   : > { %p604_p3 = pnand %p607_p2, %p824_p8 }
 0x1e7   : > { %715 = dma.done.wait (!%p604_p3), %s491_s7, 128  }
 0x1e8   : > { %717 = vsyncadd (!%p604_p3), %s491_s7, 4294967168  ;;  %s18_s23 = sadd.s32 1, %s740_s23   ;;  %s931_s18 = smov %s724_s19 }
 0x1e9   : > { %p15_p5 = scmp.ge.s32.totalorder %s18_s23, 4   ;;  %s932_s19 = smov %s728_s20 }
 0x1ea   : > { %s933_s20 = smov %s830_s6  ;;  %s934_s21 = smov %s736_s22 }
 0x1eb   : > { %s935_s22 = smov %s937_s26  ;;  %17 = sbr.rel (!%p15_p5) target bundleno = 4 (0x4), region = 75 }
 0x1f2   :  { %496 = vsyncpa [#allocation3], 1 }
 0x1f3   :  { %498 = vsyncpa [#allocation3 + $0x1], 1 }

</bundles_post_ra>
